<compile_context>
chip_gen: v7x
topology: tpu7x:2x2x1
jax: 0.10.0
libtpu: 0.0.40
codegen_flags: <defaults>
</compile_context>

<pallas_src>
import jax
import jax.numpy as jnp
import numpy as np
from jax.experimental import pallas as pl
from jax.experimental.pallas import tpu as pltpu


# ============================================================================
# Fused kernel: attention + GRU (once, at v == 0) + fc_out tile (every step).
# Grid axis 0 streams the vocab dimension in lane-dense tiles; the packed
# activation lives in a VMEM scratch and is reused by every vocab tile.
# ============================================================================
def _decoder_kernel(
    emb_ref,    # [B, E]
    hid_ref,    # [B, D]
    enc_ref,    # [B, S, 2H]
    mask_ref,   # [B, S]   (1.0 = keep, 0.0 = masked)
    aWh_ref,    # [D, D]
    aWe_ref,    # [2H, D]
    ab_ref,     # [1, D]
    av_ref,     # [1, D]
    Wi_e_ref,   # [E, 3D]   input->hidden weights, emb columns, gates r|z|n
    Wi_w_ref,   # [2H, 3D]  input->hidden weights, weighted-context columns
    Wh_ref,     # [D, 3D]   hidden->hidden weights, gates r|z|n
    bi_ref,     # [1, 3D]
    bh_ref,     # [1, 3D]
    Wfc_ref,    # [D+2H+E, TV]  fc_out weight tile (pre-transposed)
    bfc_ref,    # [1, TV]
    pred_ref,   # OUT [B, TV]  prediction tile
    hnew_ref,   # OUT [B, D]   new hidden state
    a_ref,      # OUT [B, S]   attention weights
    act_scr,    # SCRATCH VMEM [B, D + 2H + E]
):
    f32 = jnp.float32
    B, S, twoH = enc_ref.shape
    D = hid_ref.shape[1]
    E = emb_ref.shape[1]

    @pl.when(pl.program_id(0) == 0)
    def _attention_and_gru():
        emb = emb_ref[...]        # [B, E]
        hid = hid_ref[...]        # [B, D]
        enc = enc_ref[...]        # [B, S, 2H]
        mask = mask_ref[...]      # [B, S]

        # ---------------- attention (M = B*S on the MXU) ----------------
        enc2 = enc.reshape(B * S, twoH)                                   # collapse leading dims
        e_enc = jnp.dot(enc2, aWe_ref[...],
                        preferred_element_type=f32).reshape(B, S, D)      # [B, S, D]
        e_hid = jnp.dot(hid, aWh_ref[...], preferred_element_type=f32)    # [B, D]
        energy = jnp.tanh(e_enc + e_hid[:, None, :] + ab_ref[...][None])  # [B, S, D]

        # score = <energy, v>  (lane reduce), lane-major [B, S]
        scores = jnp.sum(energy * av_ref[...][None], axis=-1)             # [B, S]
        scores = jnp.where(mask > 0.0, scores, jnp.float32(-1e10))

        # masked softmax over src_len (last axis -> lane reduce)
        m = jnp.max(scores, axis=-1, keepdims=True)
        e = jnp.exp(scores - m)
        a = e / jnp.sum(e, axis=-1, keepdims=True)                        # [B, S]

        # attention-weighted context (== bmm(a.unsqueeze(1), enc_outputs))
        weighted = jnp.sum(a[:, :, None] * enc, axis=1)                   # [B, 2H]

        # ---------------- GRU cell, gates fused per source ----------------
        gi = (jnp.dot(emb, Wi_e_ref[...], preferred_element_type=f32)
              + jnp.dot(weighted, Wi_w_ref[...], preferred_element_type=f32)
              + bi_ref[...])                                              # [B, 3D]
        gh = (jnp.dot(hid, Wh_ref[...], preferred_element_type=f32)
              + bh_ref[...])                                              # [B, 3D]

        i_r, i_z, i_n = gi[:, :D], gi[:, D:2 * D], gi[:, 2 * D:]
        h_r, h_z, h_n = gh[:, :D], gh[:, D:2 * D], gh[:, 2 * D:]
        r = jax.nn.sigmoid(i_r + h_r)
        z = jax.nn.sigmoid(i_z + h_z)
        n = jnp.tanh(i_n + r * h_n)
        h_new = (1.0 - z) * n + z * hid                                   # [B, D]
        # 1-layer / 1-step GRU: output == new hidden (PyTorch assert holds)

        # pack fc_out activation: [output | weighted | embedded]
        act_scr[:, :D] = h_new
        act_scr[:, D:D + twoH] = weighted
        act_scr[:, D + twoH:D + twoH + E] = emb

        hnew_ref[...] = h_new
        a_ref[...] = a

    # ---------------- fc_out for this vocab tile (every grid step) ----------------
    pred_ref[...] = (jnp.dot(act_scr[...], Wfc_ref[...],
                             preferred_element_type=f32)
                     + bfc_ref[...])


# ============================================================================
# Wrapper helpers
# ============================================================================
def _full_spec(shape):
    nd = len(shape)
    return pl.BlockSpec(tuple(shape), lambda v, _nd=nd: (0,) * _nd)


def _choose_v_tile(V, Kfc):
    """Lane-aligned V tile.  Kept so a double-buffered [Kfc, TV] f32 weight
    tile fits comfortably in scoped VMEM on all of v5e/v6e/v7x."""
    if V <= 2048:
        return V
    budget = 12 * 1024 * 1024          # 2 buffers x Kfc x TV x 4B
    for tv in (2048, 1024, 512, 256, 128):
        if V % tv == 0 and 2 * Kfc * tv * 4 <= budget:
            return tv
    return V                           # fallback: single full-width block


def prepare_decoder_params(params):
    """One-time weight prep (split / transpose / fuse) — hoisted out of the
    per-decode-step call path."""
    D = params["W_hh"].shape[1]
    E = params["embedding"].shape[1]
    W_ih = params["W_ih"]
    prepped = {
        "embedding": params["embedding"],
        "aWh": params["attn_W"][:, :D].T,     # [D, D]
        "aWe": params["attn_W"][:, D:].T,     # [2H, D]
        "ab":  params["attn_b"][None, :],     # [1, D]
        "av":  params["attn_v"],              # [1, D]
        "Wi_e": W_ih[:, :E].T,                # [E, 3D]   gates r|z|n
        "Wi_w": W_ih[:, E:].T,                # [2H, 3D]
        "Wh":   params["W_hh"].T,             # [D, 3D]
        "bi":   params["b_ih"][None, :],      # [1, 3D]
        "bh":   params["b_hh"][None, :],      # [1, 3D]
        "Wfc":  params["fc_W"].T,             # [D+2H+E, V]  rows: output|weighted|emb
        "bfc":  params["fc_b"][None, :],      # [1, V]
    }
    return {k: v.astype(jnp.float32) for k, v in prepped.items()}


@jax.jit
def decoder_forward(input_ids, hidden, encoder_outputs, mask, prepped):
    """
    input_ids:        [B]           int32 token ids
    hidden:           [B, D]        f32
    encoder_outputs:  [S, B, 2H]    f32 (PyTorch seq-first layout)
    mask:             [B, S]        1/0
    returns (prediction [B, V], hidden_new [B, D], attention [B, S])
    """
    B = input_ids.shape[0]
    S = encoder_outputs.shape[0]
    twoH = encoder_outputs.shape[2]
    D = hidden.shape[1]
    E = prepped["embedding"].shape[1]
    V = prepped["Wfc"].shape[1]
    Kfc = D + twoH + E

    # glue: embedding gather (dropout = identity, eval) + layout transposes
    emb = prepped["embedding"][input_ids].astype(jnp.float32)             # [B, E]
    hid = hidden.astype(jnp.float32)                                      # [B, D]
    enc = jnp.transpose(encoder_outputs, (1, 0, 2)).astype(jnp.float32)   # [B, S, 2H]
    mask_f = mask.astype(jnp.float32)                                     # [B, S]

    act_args = [emb, hid, enc, mask_f]
    w_args = [prepped[k] for k in
              ("aWh", "aWe", "ab", "av", "Wi_e", "Wi_w", "Wh", "bi", "bh")]

    TV = _choose_v_tile(V, Kfc)

    pred, hidden_new, a = pl.pallas_call(
        _decoder_kernel,
        grid=(V // TV,),
        in_specs=([_full_spec(x.shape) for x in act_args + w_args]
                  + [pl.BlockSpec((Kfc, TV), lambda v: (0, v)),
                     pl.BlockSpec((1, TV), lambda v: (0, v))]),
        out_specs=(pl.BlockSpec((B, TV), lambda v: (0, v)),
                   pl.BlockSpec((B, D), lambda v: (0, 0)),
                   pl.BlockSpec((B, S), lambda v: (0, 0))),
        out_shape=(jax.ShapeDtypeStruct((B, V), jnp.float32),
                   jax.ShapeDtypeStruct((B, D), jnp.float32),
                   jax.ShapeDtypeStruct((B, S), jnp.float32)),
        scratch_shapes=[pltpu.VMEM((B, Kfc), jnp.float32)],
        compiler_params=pltpu.CompilerParams(
            dimension_semantics=("arbitrary",),   # scratch carries state from v==0
            vmem_limit_bytes=32 * 1024 * 1024),
    )(*act_args, *w_args, prepped["Wfc"], prepped["bfc"])

    return pred, hidden_new, a


# ============================================================================
# Pure-JAX reference (mirrors the PyTorch module semantics exactly)
# ============================================================================
def reference_forward(input_ids, hidden, encoder_outputs, mask, params):
    S = encoder_outputs.shape[0]
    D = hidden.shape[1]
    emb = params["embedding"][input_ids]                         # [B, E]
    hid_rep = jnp.repeat(hidden[:, None, :], S, axis=1)          # [B, S, D]
    enc_bsh = jnp.transpose(encoder_outputs, (1, 0, 2))          # [B, S, 2H]
    energy = jnp.tanh(
        jnp.concatenate([hid_rep, enc_bsh], axis=-1) @ params["attn_W"].T
        + params["attn_b"])
    att = (energy @ params["attn_v"].T)[..., 0]                  # [B, S]
    att = jnp.where(mask == 0, -1e10, att)
    a = jax.nn.softmax(att, axis=1)
    weighted = jnp.einsum("bs,bsh->bh", a, enc_bsh)              # [B, 2H]

    x = jnp.concatenate([emb, weighted], axis=1)
    gi = x @ params["W_ih"].T + params["b_ih"]
    gh = hidden @ params["W_hh"].T + params["b_hh"]
    i_r, i_z, i_n = gi[:, :D], gi[:, D:2 * D], gi[:, 2 * D:]
    h_r, h_z, h_n = gh[:, :D], gh[:, D:2 * D], gh[:, 2 * D:]
    r = jax.nn.sigmoid(i_r + h_r)
    z = jax.nn.sigmoid(i_z + h_z)
    n = jnp.tanh(i_n + r * h_n)
    h_new = (1.0 - z) * n + z * hidden

    pred = (jnp.concatenate([h_new, weighted, emb], axis=1) @ params["fc_W"].T
            + params["fc_b"])
    return pred, h_new, a


# ============================================================================
# Deterministic synthetic parameters
# ============================================================================
def init_params(key, output_dim, emb_dim, enc_hid_dim, dec_hid_dim):
    D, twoH, E, V = dec_hid_dim, 2 * enc_hid_dim, emb_dim, output_dim
    ks = jax.random.split(key, 10)
    f = jnp.float32
    return {
        "embedding": 0.1 * jax.random.normal(ks[0], (V, E), f),
        "attn_W":    0.1 * jax.random.normal(ks[1], (D, D + twoH), f),
        "attn_b":    0.1 * jax.random.normal(ks[2], (D,), f),
        "attn_v":    0.1 * jax.random.normal(ks[3], (1, D), f),
        "W_ih":      0.1 * jax.random.normal(ks[4], (3 * D, E + twoH), f),
        "W_hh":      0.1 * jax.random.normal(ks[5], (3 * D, D), f),
        "b_ih":      0.1 * jax.random.normal(ks[6], (3 * D,), f),
        "b_hh":      0.1 * jax.random.normal(ks[7], (3 * D,), f),
        "fc_W":      0.1 * jax.random.normal(ks[8], (V, D + twoH + E), f),
        "fc_b":      0.1 * jax.random.normal(ks[9], (V,), f),
    }


if __name__ == "__main__":
    # small shapes consistent with the module
    output_dim, emb_dim, enc_hid_dim, dec_hid_dim = 64, 16, 16, 32
    B, S = 2, 8

    key = jax.random.PRNGKey(0)
    kp, ki, kh, ke = jax.random.split(key, 4)
    params = init_params(kp, output_dim, emb_dim, enc_hid_dim, dec_hid_dim)

    # weight prep hoisted out of the per-decode-step loop (done once)
    prepped = prepare_decoder_params(params)

    input_ids = jax.random.randint(ki, (B,), 0, output_dim)
    hidden = jax.random.normal(kh, (B, dec_hid_dim), jnp.float32)
    encoder_outputs = jax.random.normal(ke, (S, B, 2 * enc_hid_dim), jnp.float32)
    lengths = jnp.array([S, 5])
    mask = (jnp.arange(S)[None, :] < lengths[:, None]).astype(jnp.float32)   # [B, S]

    pred, hid_new, a = decoder_forward(input_ids, hidden, encoder_outputs, mask, prepped)
    jax.block_until_ready((pred, hid_new, a))

    pred_r, hid_r, a_r = reference_forward(input_ids, hidden, encoder_outputs, mask, params)
    assert pred.shape == (B, output_dim)
    assert hid_new.shape == (B, dec_hid_dim)
    assert a.shape == (B, S)
    assert np.allclose(np.asarray(pred), np.asarray(pred_r), atol=1e-4, rtol=1e-4)
    assert np.allclose(np.asarray(hid_new), np.asarray(hid_r), atol=1e-4, rtol=1e-4)
    assert np.allclose(np.asarray(a), np.asarray(a_r), atol=1e-4, rtol=1e-4)

    print("KERNEL_OK")
</pallas_src>

<mosaic_0001>
module attributes {stable_mosaic.version = 11 : i64} {
  func.func @_decoder_kernel(%arg0: i32, %arg1: memref<2x16xf32, #tpu.memory_space<vmem>>, %arg2: memref<2x32xf32, #tpu.memory_space<vmem>>, %arg3: memref<2x8x32xf32, #tpu.memory_space<vmem>>, %arg4: memref<2x8xf32, #tpu.memory_space<vmem>>, %arg5: memref<32x32xf32, #tpu.memory_space<vmem>>, %arg6: memref<32x32xf32, #tpu.memory_space<vmem>>, %arg7: memref<1x32xf32, #tpu.memory_space<vmem>>, %arg8: memref<1x32xf32, #tpu.memory_space<vmem>>, %arg9: memref<16x96xf32, #tpu.memory_space<vmem>>, %arg10: memref<32x96xf32, #tpu.memory_space<vmem>>, %arg11: memref<32x96xf32, #tpu.memory_space<vmem>>, %arg12: memref<1x96xf32, #tpu.memory_space<vmem>>, %arg13: memref<1x96xf32, #tpu.memory_space<vmem>>, %arg14: memref<80x64xf32, #tpu.memory_space<vmem>>, %arg15: memref<1x64xf32, #tpu.memory_space<vmem>>, %arg16: memref<2x64xf32, #tpu.memory_space<vmem>>, %arg17: memref<2x32xf32, #tpu.memory_space<vmem>>, %arg18: memref<2x8xf32, #tpu.memory_space<vmem>>, %arg19: memref<2x80xf32, #tpu.memory_space<vmem>>) attributes {dimension_semantics = [#tpu.dimension_semantics<arbitrary>], iteration_bounds = array<i64: 1>, scalar_prefetch = 0 : i64, scratch_operands = 1 : i64, tpu.core_type = #tpu.core_type<tc>, window_params = [{pipeline_mode = #tpu.pipeline_mode<synchronous>, transform_indices = @transform_0, window_bounds = array<i64: 2, 16>}, {pipeline_mode = #tpu.pipeline_mode<synchronous>, transform_indices = @transform_1, window_bounds = array<i64: 2, 32>}, {pipeline_mode = #tpu.pipeline_mode<synchronous>, transform_indices = @transform_2, window_bounds = array<i64: 2, 8, 32>}, {pipeline_mode = #tpu.pipeline_mode<synchronous>, transform_indices = @transform_3, window_bounds = array<i64: 2, 8>}, {pipeline_mode = #tpu.pipeline_mode<synchronous>, transform_indices = @transform_4, window_bounds = array<i64: 32, 32>}, {pipeline_mode = #tpu.pipeline_mode<synchronous>, transform_indices = @transform_5, window_bounds = array<i64: 32, 32>}, {pipeline_mode = #tpu.pipeline_mode<synchronous>, transform_indices = @transform_6, window_bounds = array<i64: 1, 32>}, {pipeline_mode = #tpu.pipeline_mode<synchronous>, transform_indices = @transform_7, window_bounds = array<i64: 1, 32>}, {pipeline_mode = #tpu.pipeline_mode<synchronous>, transform_indices = @transform_8, window_bounds = array<i64: 16, 96>}, {pipeline_mode = #tpu.pipeline_mode<synchronous>, transform_indices = @transform_9, window_bounds = array<i64: 32, 96>}, {pipeline_mode = #tpu.pipeline_mode<synchronous>, transform_indices = @transform_10, window_bounds = array<i64: 32, 96>}, {pipeline_mode = #tpu.pipeline_mode<synchronous>, transform_indices = @transform_11, window_bounds = array<i64: 1, 96>}, {pipeline_mode = #tpu.pipeline_mode<synchronous>, transform_indices = @transform_12, window_bounds = array<i64: 1, 96>}, {transform_indices = @transform_13, window_bounds = array<i64: 80, 64>}, {transform_indices = @transform_14, window_bounds = array<i64: 1, 64>}, {transform_indices = @transform_15, window_bounds = array<i64: 2, 64>}, {pipeline_mode = #tpu.pipeline_mode<synchronous>, transform_indices = @transform_16, window_bounds = array<i64: 2, 32>}, {pipeline_mode = #tpu.pipeline_mode<synchronous>, transform_indices = @transform_17, window_bounds = array<i64: 2, 8>}]} {
    %c0_i32 = arith.constant 0 : i32
    %0 = arith.cmpi eq, %arg0, %c0_i32 : i32
    %1 = arith.extui %0 : i1 to i32
    %c0_i32_0 = arith.constant 0 : i32
    %2 = arith.cmpi ne, %1, %c0_i32_0 : i32
    scf.if %2 {
      %c0_8 = arith.constant 0 : index
      %c0_9 = arith.constant 0 : index
      %10 = vector.load %arg1[%c0_8, %c0_9] : memref<2x16xf32, #tpu.memory_space<vmem>>, vector<2x16xf32>
      %c0_10 = arith.constant 0 : index
      %c0_11 = arith.constant 0 : index
      %11 = vector.load %arg2[%c0_10, %c0_11] : memref<2x32xf32, #tpu.memory_space<vmem>>, vector<2x32xf32>
      %c0_12 = arith.constant 0 : index
      %c0_13 = arith.constant 0 : index
      %c0_14 = arith.constant 0 : index
      %12 = vector.load %arg3[%c0_12, %c0_13, %c0_14] : memref<2x8x32xf32, #tpu.memory_space<vmem>>, vector<2x8x32xf32>
      %c0_15 = arith.constant 0 : index
      %c0_16 = arith.constant 0 : index
      %13 = vector.load %arg4[%c0_15, %c0_16] : memref<2x8xf32, #tpu.memory_space<vmem>>, vector<2x8xf32>
      %14 = vector.shape_cast %12 : vector<2x8x32xf32> to vector<16x32xf32>
      %c0_17 = arith.constant 0 : index
      %c0_18 = arith.constant 0 : index
      %15 = vector.load %arg6[%c0_17, %c0_18] : memref<32x32xf32, #tpu.memory_space<vmem>>, vector<32x32xf32>
      %cst_19 = arith.constant dense<0.000000e+00> : vector<16x32xf32>
      %16 = tpu.matmul %14, %15, %cst_19 {dimension_numbers = #tpu.dot_dimension_numbers<[1], [0], [0], [1], [0, 0, 1, 1], [], []>} : vector<16x32xf32>, vector<32x32xf32>, vector<16x32xf32> -> vector<16x32xf32>
      %17 = vector.shape_cast %16 : vector<16x32xf32> to vector<2x8x32xf32>
      %c0_20 = arith.constant 0 : index
      %c0_21 = arith.constant 0 : index
      %18 = vector.load %arg5[%c0_20, %c0_21] : memref<32x32xf32, #tpu.memory_space<vmem>>, vector<32x32xf32>
      %cst_22 = arith.constant dense<0.000000e+00> : vector<2x32xf32>
      %19 = tpu.matmul %11, %18, %cst_22 {dimension_numbers = #tpu.dot_dimension_numbers<[1], [0], [0], [1], [0, 0, 1, 1], [], []>} : vector<2x32xf32>, vector<32x32xf32>, vector<2x32xf32> -> vector<2x32xf32>
      %20 = vector.shape_cast %19 : vector<2x32xf32> to vector<2x1x32xf32>
      %21 = vector.broadcast %20 : vector<2x1x32xf32> to vector<2x8x32xf32>
      %22 = arith.addf %17, %21 : vector<2x8x32xf32>
      %c0_23 = arith.constant 0 : index
      %c0_24 = arith.constant 0 : index
      %23 = vector.load %arg7[%c0_23, %c0_24] : memref<1x32xf32, #tpu.memory_space<vmem>>, vector<1x32xf32>
      %24 = vector.shape_cast %23 : vector<1x32xf32> to vector<1x1x32xf32>
      %25 = vector.broadcast %24 : vector<1x1x32xf32> to vector<2x8x32xf32>
      %26 = arith.addf %22, %25 : vector<2x8x32xf32>
      %27 = math.tanh %26 : vector<2x8x32xf32>
      %c0_25 = arith.constant 0 : index
      %c0_26 = arith.constant 0 : index
      %28 = vector.load %arg8[%c0_25, %c0_26] : memref<1x32xf32, #tpu.memory_space<vmem>>, vector<1x32xf32>
      %29 = vector.shape_cast %28 : vector<1x32xf32> to vector<1x1x32xf32>
      %30 = vector.broadcast %29 : vector<1x1x32xf32> to vector<2x8x32xf32>
      %31 = arith.mulf %27, %30 : vector<2x8x32xf32>
      %cst_27 = arith.constant dense<0.000000e+00> : vector<2x8xf32>
      %32 = vector.multi_reduction <add>, %31, %cst_27 [2] : vector<2x8x32xf32> to vector<2x8xf32>
      %cst_28 = arith.constant 0.000000e+00 : f32
      %33 = vector.broadcast %cst_28 : f32 to vector<2x8xf32>
      %34 = arith.cmpf ogt, %13, %33 : vector<2x8xf32>
      %cst_29 = arith.constant -1.000000e+10 : f32
      %35 = vector.broadcast %cst_29 : f32 to vector<2x8xf32>
      %36 = arith.select %34, %32, %35 : vector<2x8xi1>, vector<2x8xf32>
      %cst_30 = arith.constant dense<0xFF800000> : vector<2xf32>
      %37 = vector.multi_reduction <maximumf>, %36, %cst_30 [1] : vector<2x8xf32> to vector<2xf32>
      %38 = vector.shape_cast %37 : vector<2xf32> to vector<2x1xf32>
      %39 = vector.broadcast %38 : vector<2x1xf32> to vector<2x8xf32>
      %40 = arith.subf %36, %39 : vector<2x8xf32>
      %41 = math.exp %40 : vector<2x8xf32>
      %cst_31 = arith.constant dense<0.000000e+00> : vector<2xf32>
      %42 = vector.multi_reduction <add>, %41, %cst_31 [1] : vector<2x8xf32> to vector<2xf32>
      %43 = vector.shape_cast %42 : vector<2xf32> to vector<2x1xf32>
      %44 = vector.broadcast %43 : vector<2x1xf32> to vector<2x8xf32>
      %45 = arith.divf %41, %44 : vector<2x8xf32>
      %46 = vector.shape_cast %45 : vector<2x8xf32> to vector<2x8x1xf32>
      %47 = vector.broadcast %46 : vector<2x8x1xf32> to vector<2x8x32xf32>
      %48 = arith.mulf %47, %12 : vector<2x8x32xf32>
      %cst_32 = arith.constant dense<0.000000e+00> : vector<2x32xf32>
      %49 = vector.multi_reduction <add>, %48, %cst_32 [1] : vector<2x8x32xf32> to vector<2x32xf32>
      %c0_33 = arith.constant 0 : index
      %c0_34 = arith.constant 0 : index
      %50 = vector.load %arg9[%c0_33, %c0_34] : memref<16x96xf32, #tpu.memory_space<vmem>>, vector<16x96xf32>
      %cst_35 = arith.constant dense<0.000000e+00> : vector<2x96xf32>
      %51 = tpu.matmul %10, %50, %cst_35 {dimension_numbers = #tpu.dot_dimension_numbers<[1], [0], [0], [1], [0, 0, 1, 1], [], []>} : vector<2x16xf32>, vector<16x96xf32>, vector<2x96xf32> -> vector<2x96xf32>
      %c0_36 = arith.constant 0 : index
      %c0_37 = arith.constant 0 : index
      %52 = vector.load %arg10[%c0_36, %c0_37] : memref<32x96xf32, #tpu.memory_space<vmem>>, vector<32x96xf32>
      %cst_38 = arith.constant dense<0.000000e+00> : vector<2x96xf32>
      %53 = tpu.matmul %49, %52, %cst_38 {dimension_numbers = #tpu.dot_dimension_numbers<[1], [0], [0], [1], [0, 0, 1, 1], [], []>} : vector<2x32xf32>, vector<32x96xf32>, vector<2x96xf32> -> vector<2x96xf32>
      %54 = arith.addf %51, %53 : vector<2x96xf32>
      %c0_39 = arith.constant 0 : index
      %c0_40 = arith.constant 0 : index
      %55 = vector.load %arg12[%c0_39, %c0_40] : memref<1x96xf32, #tpu.memory_space<vmem>>, vector<1x96xf32>
      %56 = vector.broadcast %55 : vector<1x96xf32> to vector<2x96xf32>
      %57 = arith.addf %54, %56 : vector<2x96xf32>
      %c0_41 = arith.constant 0 : index
      %c0_42 = arith.constant 0 : index
      %58 = vector.load %arg11[%c0_41, %c0_42] : memref<32x96xf32, #tpu.memory_space<vmem>>, vector<32x96xf32>
      %cst_43 = arith.constant dense<0.000000e+00> : vector<2x96xf32>
      %59 = tpu.matmul %11, %58, %cst_43 {dimension_numbers = #tpu.dot_dimension_numbers<[1], [0], [0], [1], [0, 0, 1, 1], [], []>} : vector<2x32xf32>, vector<32x96xf32>, vector<2x96xf32> -> vector<2x96xf32>
      %c0_44 = arith.constant 0 : index
      %c0_45 = arith.constant 0 : index
      %60 = vector.load %arg13[%c0_44, %c0_45] : memref<1x96xf32, #tpu.memory_space<vmem>>, vector<1x96xf32>
      %61 = vector.broadcast %60 : vector<1x96xf32> to vector<2x96xf32>
      %62 = arith.addf %59, %61 : vector<2x96xf32>
      %63 = vector.extract_strided_slice %57 {offsets = [0, 0], sizes = [2, 32], strides = [1, 1]} : vector<2x96xf32> to vector<2x32xf32>
      %64 = vector.extract_strided_slice %57 {offsets = [0, 32], sizes = [2, 32], strides = [1, 1]} : vector<2x96xf32> to vector<2x32xf32>
      %65 = vector.extract_strided_slice %57 {offsets = [0, 64], sizes = [2, 32], strides = [1, 1]} : vector<2x96xf32> to vector<2x32xf32>
      %66 = vector.extract_strided_slice %62 {offsets = [0, 0], sizes = [2, 32], strides = [1, 1]} : vector<2x96xf32> to vector<2x32xf32>
      %67 = vector.extract_strided_slice %62 {offsets = [0, 32], sizes = [2, 32], strides = [1, 1]} : vector<2x96xf32> to vector<2x32xf32>
      %68 = vector.extract_strided_slice %62 {offsets = [0, 64], sizes = [2, 32], strides = [1, 1]} : vector<2x96xf32> to vector<2x32xf32>
      %69 = arith.addf %63, %66 : vector<2x32xf32>
      %70 = arith.negf %69 : vector<2x32xf32>
      %71 = math.exp %70 : vector<2x32xf32>
      %cst_46 = arith.constant 1.000000e+00 : f32
      %72 = vector.broadcast %cst_46 : f32 to vector<2x32xf32>
      %73 = arith.addf %72, %71 : vector<2x32xf32>
      %74 = arith.divf %72, %73 : vector<2x32xf32>
      %75 = arith.addf %64, %67 : vector<2x32xf32>
      %76 = arith.negf %75 : vector<2x32xf32>
      %77 = math.exp %76 : vector<2x32xf32>
      %cst_47 = arith.constant 1.000000e+00 : f32
      %78 = vector.broadcast %cst_47 : f32 to vector<2x32xf32>
      %79 = arith.addf %78, %77 : vector<2x32xf32>
      %80 = arith.divf %78, %79 : vector<2x32xf32>
      %81 = arith.mulf %74, %68 : vector<2x32xf32>
      %82 = arith.addf %65, %81 : vector<2x32xf32>
      %83 = math.tanh %82 : vector<2x32xf32>
      %cst_48 = arith.constant 1.000000e+00 : f32
      %84 = vector.broadcast %cst_48 : f32 to vector<2x32xf32>
      %85 = arith.subf %84, %80 : vector<2x32xf32>
      %86 = arith.mulf %85, %83 : vector<2x32xf32>
      %87 = arith.mulf %80, %11 : vector<2x32xf32>
      %88 = arith.addf %86, %87 : vector<2x32xf32>
      %c0_49 = arith.constant 0 : index
      %c0_50 = arith.constant 0 : index
      %89 = vector.load %arg19[%c0_49, %c0_50] : memref<2x80xf32, #tpu.memory_space<vmem>>, vector<2x32xf32>
      tpu.vector_store %arg19[%c0_49, %c0_50], %88 {strides = array<i32>} : memref<2x80xf32, #tpu.memory_space<vmem>>, vector<2x32xf32>,
      %c0_51 = arith.constant 0 : index
      %c32 = arith.constant 32 : index
      %90 = vector.load %arg19[%c0_51, %c32] : memref<2x80xf32, #tpu.memory_space<vmem>>, vector<2x32xf32>
      tpu.vector_store %arg19[%c0_51, %c32], %49 {strides = array<i32>} : memref<2x80xf32, #tpu.memory_space<vmem>>, vector<2x32xf32>,
      %c0_52 = arith.constant 0 : index
      %c64 = arith.constant 64 : index
      %91 = vector.load %arg19[%c0_52, %c64] : memref<2x80xf32, #tpu.memory_space<vmem>>, vector<2x16xf32>
      tpu.vector_store %arg19[%c0_52, %c64], %10 {strides = array<i32>} : memref<2x80xf32, #tpu.memory_space<vmem>>, vector<2x16xf32>,
      %c0_53 = arith.constant 0 : index
      %c0_54 = arith.constant 0 : index
      %92 = vector.load %arg17[%c0_53, %c0_54] : memref<2x32xf32, #tpu.memory_space<vmem>>, vector<2x32xf32>
      tpu.vector_store %arg17[%c0_53, %c0_54], %88 {strides = array<i32>} : memref<2x32xf32, #tpu.memory_space<vmem>>, vector<2x32xf32>,
      %c0_55 = arith.constant 0 : index
      %c0_56 = arith.constant 0 : index
      %93 = vector.load %arg18[%c0_55, %c0_56] : memref<2x8xf32, #tpu.memory_space<vmem>>, vector<2x8xf32>
      tpu.vector_store %arg18[%c0_55, %c0_56], %45 {strides = array<i32>} : memref<2x8xf32, #tpu.memory_space<vmem>>, vector<2x8xf32>,
    } else {
    }
    %c0 = arith.constant 0 : index
    %c0_1 = arith.constant 0 : index
    %3 = vector.load %arg19[%c0, %c0_1] : memref<2x80xf32, #tpu.memory_space<vmem>>, vector<2x80xf32>
    %c0_2 = arith.constant 0 : index
    %c0_3 = arith.constant 0 : index
    %4 = vector.load %arg14[%c0_2, %c0_3] : memref<80x64xf32, #tpu.memory_space<vmem>>, vector<80x64xf32>
    %cst = arith.constant dense<0.000000e+00> : vector<2x64xf32>
    %5 = tpu.matmul %3, %4, %cst {dimension_numbers = #tpu.dot_dimension_numbers<[1], [0], [0], [1], [0, 0, 1, 1], [], []>} : vector<2x80xf32>, vector<80x64xf32>, vector<2x64xf32> -> vector<2x64xf32>
    %c0_4 = arith.constant 0 : index
    %c0_5 = arith.constant 0 : index
    %6 = vector.load %arg15[%c0_4, %c0_5] : memref<1x64xf32, #tpu.memory_space<vmem>>, vector<1x64xf32>
    %7 = vector.broadcast %6 : vector<1x64xf32> to vector<2x64xf32>
    %8 = arith.addf %5, %7 : vector<2x64xf32>
    %c0_6 = arith.constant 0 : index
    %c0_7 = arith.constant 0 : index
    %9 = vector.load %arg16[%c0_6, %c0_7] : memref<2x64xf32, #tpu.memory_space<vmem>>, vector<2x64xf32>
    tpu.vector_store %arg16[%c0_6, %c0_7], %8 {strides = array<i32>} : memref<2x64xf32, #tpu.memory_space<vmem>>, vector<2x64xf32>,
    return
  }
  func.func @transform_0(%arg0: i32) -> (i32, i32) {
    %c0_i32 = arith.constant 0 : i32
    %c0_i32_0 = arith.constant 0 : i32
    %c0_i32_1 = arith.constant 0 : i32
    return %c0_i32, %c0_i32_0 : i32, i32
  }
  func.func @transform_1(%arg0: i32) -> (i32, i32) {
    %c0_i32 = arith.constant 0 : i32
    %c0_i32_0 = arith.constant 0 : i32
    %c0_i32_1 = arith.constant 0 : i32
    return %c0_i32, %c0_i32_0 : i32, i32
  }
  func.func @transform_2(%arg0: i32) -> (i32, i32, i32) {
    %c0_i32 = arith.constant 0 : i32
    %c0_i32_0 = arith.constant 0 : i32
    %c0_i32_1 = arith.constant 0 : i32
    %c0_i32_2 = arith.constant 0 : i32
    return %c0_i32, %c0_i32_0, %c0_i32_1 : i32, i32, i32
  }
  func.func @transform_3(%arg0: i32) -> (i32, i32) {
    %c0_i32 = arith.constant 0 : i32
    %c0_i32_0 = arith.constant 0 : i32
    %c0_i32_1 = arith.constant 0 : i32
    return %c0_i32, %c0_i32_0 : i32, i32
  }
  func.func @transform_4(%arg0: i32) -> (i32, i32) {
    %c0_i32 = arith.constant 0 : i32
    %c0_i32_0 = arith.constant 0 : i32
    %c0_i32_1 = arith.constant 0 : i32
    return %c0_i32, %c0_i32_0 : i32, i32
  }
  func.func @transform_5(%arg0: i32) -> (i32, i32) {
    %c0_i32 = arith.constant 0 : i32
    %c0_i32_0 = arith.constant 0 : i32
    %c0_i32_1 = arith.constant 0 : i32
    return %c0_i32, %c0_i32_0 : i32, i32
  }
  func.func @transform_6(%arg0: i32) -> (i32, i32) {
    %c0_i32 = arith.constant 0 : i32
    %c0_i32_0 = arith.constant 0 : i32
    %c0_i32_1 = arith.constant 0 : i32
    return %c0_i32, %c0_i32_0 : i32, i32
  }
  func.func @transform_7(%arg0: i32) -> (i32, i32) {
    %c0_i32 = arith.constant 0 : i32
    %c0_i32_0 = arith.constant 0 : i32
    %c0_i32_1 = arith.constant 0 : i32
    return %c0_i32, %c0_i32_0 : i32, i32
  }
  func.func @transform_8(%arg0: i32) -> (i32, i32) {
    %c0_i32 = arith.constant 0 : i32
    %c0_i32_0 = arith.constant 0 : i32
    %c0_i32_1 = arith.constant 0 : i32
    return %c0_i32, %c0_i32_0 : i32, i32
  }
  func.func @transform_9(%arg0: i32) -> (i32, i32) {
    %c0_i32 = arith.constant 0 : i32
    %c0_i32_0 = arith.constant 0 : i32
    %c0_i32_1 = arith.constant 0 : i32
    return %c0_i32, %c0_i32_0 : i32, i32
  }
  func.func @transform_10(%arg0: i32) -> (i32, i32) {
    %c0_i32 = arith.constant 0 : i32
    %c0_i32_0 = arith.constant 0 : i32
    %c0_i32_1 = arith.constant 0 : i32
    return %c0_i32, %c0_i32_0 : i32, i32
  }
  func.func @transform_11(%arg0: i32) -> (i32, i32) {
    %c0_i32 = arith.constant 0 : i32
    %c0_i32_0 = arith.constant 0 : i32
    %c0_i32_1 = arith.constant 0 : i32
    return %c0_i32, %c0_i32_0 : i32, i32
  }
  func.func @transform_12(%arg0: i32) -> (i32, i32) {
    %c0_i32 = arith.constant 0 : i32
    %c0_i32_0 = arith.constant 0 : i32
    %c0_i32_1 = arith.constant 0 : i32
    return %c0_i32, %c0_i32_0 : i32, i32
  }
  func.func @transform_13(%arg0: i32) -> (i32, i32) {
    %c0_i32 = arith.constant 0 : i32
    %c0_i32_0 = arith.constant 0 : i32
    return %c0_i32, %arg0 : i32, i32
  }
  func.func @transform_14(%arg0: i32) -> (i32, i32) {
    %c0_i32 = arith.constant 0 : i32
    %c0_i32_0 = arith.constant 0 : i32
    return %c0_i32, %arg0 : i32, i32
  }
  func.func @transform_15(%arg0: i32) -> (i32, i32) {
    %c0_i32 = arith.constant 0 : i32
    %c0_i32_0 = arith.constant 0 : i32
    return %c0_i32, %arg0 : i32, i32
  }
  func.func @transform_16(%arg0: i32) -> (i32, i32) {
    %c0_i32 = arith.constant 0 : i32
    %c0_i32_0 = arith.constant 0 : i32
    %c0_i32_1 = arith.constant 0 : i32
    return %c0_i32, %c0_i32_0 : i32, i32
  }
  func.func @transform_17(%arg0: i32) -> (i32, i32) {
    %c0_i32 = arith.constant 0 : i32
    %c0_i32_0 = arith.constant 0 : i32
    %c0_i32_1 = arith.constant 0 : i32
    return %c0_i32, %c0_i32_0 : i32, i32
  }
}

</mosaic_0001>

<bundles_post_ra>
// kernel: decoder_forward.1
= control target key start
LH: loop header
LB: loop body
LE: loop exit
PB: predicated region body
PF: predicated region fallthrough
CT: control target
= control target key end

     0   :  { %s1350_s0 = inlined_call_operand.vmem [shape: f32[2,16], index: 0, kind: input, shape index: {}]   ;;  %s1351_s1 = inlined_call_operand.vmem [shape: f32[2,32], index: 1, kind: input, shape index: {}]   ;;  %s1352_s2 = inlined_call_operand.vmem [shape: f32[2,8,32], index: 2, kind: input, shape index: {}]   ;;  %s1353_s3 = inlined_call_operand.vmem [shape: f32[2,8], index: 3, kind: input, shape index: {}]   ;;  %s1354_s4 = inlined_call_operand.vmem [shape: f32[32,32], index: 4, kind: input, shape index: {}]   ;;  %s1355_s5 = inlined_call_operand.vmem [shape: f32[32,32], index: 5, kind: input, shape index: {}]   ;;  %s1356_s6 = inlined_call_operand.vmem [shape: f32[1,32], index: 6, kind: input, shape index: {}]   ;;  %s1357_s7 = inlined_call_operand.vmem [shape: f32[1,32], index: 7, kind: input, shape index: {}]   ;;  %s1358_s8 = inlined_call_operand.vmem [shape: f32[16,96], index: 8, kind: input, shape index: {}]   ;;  %s1359_s9 = inlined_call_operand.vmem [shape: f32[32,96], index: 9, kind: input, shape index: {}]   ;;  %s1360_s10 = inlined_call_operand.vmem [shape: f32[32,96], index: 10, kind: input, shape index: {}]   ;;  %s1361_s11 = inlined_call_operand.vmem [shape: f32[1,96], index: 11, kind: input, shape index: {}]   ;;  %s1362_s12 = inlined_call_operand.vmem [shape: f32[1,96], index: 12, kind: input, shape index: {}]   ;;  %s1363_s13 = inlined_call_operand.vmem [shape: f32[80,64], index: 13, kind: input, shape index: {}]   ;;  %s1364_s14 = inlined_call_operand.vmem [shape: f32[1,64], index: 14, kind: input, shape index: {}]   ;;  %s1365_s15 = inlined_call_operand.hbm [shape: f32[2,64], index: 15, kind: output, shape index: {0}]   ;;  %s1366_s16 = inlined_call_operand.hbm [shape: f32[2,32], index: 16, kind: output, shape index: {1}]   ;;  %s1367_s17 = inlined_call_operand.hbm [shape: f32[2,8], index: 17, kind: output, shape index: {2}]  }
   0x1   :  { %1368 = sst [smem:[#allocation10_spill]] %s1350_s0 }
   0x2   :  { %1369 = sst [smem:[#allocation11_spill]] %s1351_s1 }
   0x3   :  { %23 = vsyncpa [#allocation4], 0  ;;  %v64_v0 = vld [vmem:[%s1355_s5] sm:$0xff]  ;;  %v65_v1 = vld [vmem:[%s1355_s5 + $0x8] sm:$0xff]  ;;  %vm68_vm0 = vcmask 261120   ;;  %v1033_v6 = vmov 0.0|0.0  }
   0x4   :  { %v66_v2 = vld [vmem:[%s1355_s5 + $0x10] sm:$0xff]  ;;  %v895_v3 = vpack.c.bf16 %v65_v1, %v64_v0  ;;  %v67_v4 = vld [vmem:[%s1355_s5 + $0x18] sm:$0xff]  ;;  %v1148_v5 = vld [vmem:[%s1352_s2] sm:$0xff]  ;;  %909 = vmatprep.subr.bf16.mxu0 %v1033_v6  ;;  %vm1034_vm1 = vmmov 0   ;;  %v1035_v8 = vmov 0.0  }
   0x5   :  { %v899_v7 = vpack.c.bf16 %v67_v4, %v66_v2  ;;  %829 = vmatprep.mubr.msk.f32.mxu1 %vm68_vm0, %v1148_v5  ;;  %851 = vmatprep.mubr.msk.f32.mxu0 %vm1034_vm1, %v1035_v8 }
   0x6   :  { %896 = vmatprep.subr.bf16.mxu1 %v895_v3 }
   0x7   :  { %24 = vsyncpa [#allocation6], 0  ;;  %898 = vmatpush3.bf16.msra.mxu1 %v895_v3  ;;  %v150_v9 = vld [vmem:[%s1354_s4] sm:$0xff]  ;;  %v151_v10 = vld [vmem:[%s1354_s4 + $0x8] sm:$0xff]  ;;  %s1370_s29 = sld [smem:[#allocation11_spill]]  ;;  %v231_v19 = vlaneseq  ;;  %vm301_vm2 = vcmask 1041409  }
   0x8   :  { %900 = vmatprep.subr.bf16.mxu1 %v899_v7  ;;  %v1164_v11 = vld [vmem:[%s1352_s2 + $0x8] sm:$0xff]  ;;  %v904_v12 = vpack.c.bf16 %v151_v10, %v150_v9  ;;  %v152_v13 = vld [vmem:[%s1354_s4 + $0x10] sm:$0xff]  ;;  %v153_v14 = vld [vmem:[%s1354_s4 + $0x18] sm:$0xff]  ;;  %v1036_v17 = vmov 1966171168   ;;  %vm305_vm4 = vcmask 58368  }
   0x9   :  { %v907_v15 = vpack.c.bf16 %v153_v14, %v152_v13  ;;  %v229_v18 = vunpack.c.l.s4 %v1036_v17  ;;  %v1188_v23 = vshrl.u32 %v231_v19, 7  ;;  %v776_v33 = vld [vmem:[%s1356_s6] ss:$0 sm:$0xff]  ;;  %v292_v46 = vand.u32 127, %v231_v19  ;;  %v348_v62 = vld [vmem:[%s1358_s8 + $0x8] sm:$0xff]  ;;  %s1371_s26 = sld [smem:[#allocation10_spill]] }
   0xa   :  { %v777_v39 = vld [vmem:[%s1357_s7] ss:$0 sm:$0xff]  ;;  %v511_v1 = vld [vmem:[%s1360_s10 + $0x8] sm:$0xff]  ;;  %vm428_vm5 = vcmask 130048   ;;  %v512_v4 = vld [vmem:[%s1360_s10 + $0x10] sm:$0xff]  ;;  %s1038_s1 = smov 32  }
   0xb   :  { %902 = vmatpush3.bf16.msra.mxu1 %v899_v7  ;;  %v230_v22 = vunpack.c.0.s8 %v229_v18  ;;  %v1192_v27 = vsub.s32 0, %v1188_v23  ;;  %v295_v48 = vsub.s32 %v292_v46, %v1188_v23  ;;  %v63_v49 = vld [vmem:[%s1353_s3] sm:$0x3]  ;;  %v513_v7 = vld [vmem:[%s1360_s10 + $0x18] sm:$0xff]  ;;  %v350_v13 = vld [vmem:[%s1359_s9 + $0x8] sm:$0xff]  ;;  %v326_v14 = vsub.s32 1, %v1188_v23 }
   0xc   :  { %903 = vmatprep.subr.bf16.mxu1 %v1033_v6  ;;  %vm288_vm3 = vcmp.gt.f32.partialorder %v63_v49, 0.0  ;;  %v347_v61 = vld [vmem:[%s1358_s8] sm:$0xff]  ;;  %v922_v9 = vpack.c.bf16 %v513_v7, %v512_v4  ;;  %v351_v19 = vld [vmem:[%s1359_s9 + $0x10] sm:$0xff]  ;;  %s1039_s8 = smov 96   ;;  %v644_v4 = vld [vmem:[%s1363_s13 + $0x28] sm:$0xff]  ;;  %vm624_vm6 = vcmask 254976  }
   0xd   :  { %v1181_v16 = vld [vmem:[%s1370_s29] sm:$0x3]  ;;  %v233_v24 = vsub.s32 %v230_v22, %v1188_v23  ;;  %v916_v63 = vpack.c.bf16 %v348_v62, %v347_v61  ;;  %v640_v61 = vld [vmem:[%s1363_s13 + $0x8] sm:$0xff]  ;;  %v641_v62 = vld [vmem:[%s1363_s13 + $0x10] sm:$0xff]  ;;  %vm629_vm7 = vcmask 517376   ;;  %vm634_vm8 = vcmask 648704  }
   0xe   :  { %830 = vmatmul.mubr.msk.f32.vlgmr.msra.gmra.mrb[0].mxu1 %vm68_vm0, %v1164_v11  ;;  %v510_v0 = vld [vmem:[%s1360_s10] sm:$0xff]  ;;  %vm656_vm9 = vcmask 654336  }
   0xf   :  { %905 = vmatpush3.bf16.msra.mxu1 %v904_v12  ;;  %840 = vmatprep.mubr.msk.f32.mxu1 %vm1034_vm1, %v1035_v8  ;;  %v1226_v2 = vld [vmem:[%s1371_s26] sm:$0x3]  ;;  %v919_v3 = vpack.c.bf16 %v511_v1, %v510_v0 }
  0x10   :  { %906 = vmatprep.subr.bf16.mxu1 %v1033_v6  ;;  %v349_v12 = vld [vmem:[%s1359_s9] sm:$0xff] }
  0x13   :  { %908 = vmatpush3.bf16.msra.mxu1 %v907_v15  ;;  %v910_v15 = vpack.c.bf16 %v350_v13, %v349_v12  ;;  %v647_v13 = vld [vmem:[%s1363_s13 + $0x40] sm:$0xff] }
  0x14   :  { %915 = vmatprep.subr.bf16.mxu1 %v1033_v6 }
  0x15   :  { %911 = vmatpush3.bf16.msra.mxu0 %v910_v15 }
  0x16   :  { %841 = vmatmul.mubr.msk.f32.vlgmr.msra.gmra.mrb[2].mxu1 %vm68_vm0, %v1181_v16  ;;  %912 = vmatprep.subr.bf16.mxu0 %v1033_v6 }
  0x17   :  { %858 = vmatprep.mubr.msk.f32.mxu1 %vm1034_vm1, %v1035_v8  ;;  %917 = vmatpush3.bf16.msra.mxu1 %v916_v63 }
  0x18   :  { %918 = vmatprep.subr.bf16.mxu1 %v1033_v6 }
  0x1a   :  { %859 = vmatmul.mubr.msk.f32.vlgmr.msra.gmra.mrb[4].mxu1 %vm428_vm5, %v1226_v2 }
  0x1b   :  { %920 = vmatpush3.bf16.msra.mxu1 %v919_v3  ;;  %869 = vmatprep.mubr.msk.f32.mxu1 %vm1034_vm1, %v1035_v8  ;;  %v643_v3 = vld [vmem:[%s1363_s13 + $0x20] sm:$0xff] }
  0x1c   :  { %921 = vmatprep.subr.bf16.mxu1 %v1033_v6  ;;  %v931_v7 = vpack.c.bf16 %v644_v4, %v643_v3 }
  0x1f   :  { %923 = vmatpush3.bf16.msra.mxu1 %v922_v9  ;;  %v645_v9 = vld [vmem:[%s1363_s13 + $0x30] sm:$0xff] }
  0x22   :  { %870 = vmatmul.mubr.msk.f32.vlgmr.msra.gmra.mrb[6].mxu1 %vm68_vm0, %v1181_v16 }
  0xe1   :  { %v831_v20 = vpop.f32.mrb[0].mxu1 }
  0xe2   :  { %v141_v21 = vpop.f32.mrb[1].mxu1 }
  0xe9   :  { %v223_v25 = vpop.f32.mrb[2].mxu1 }
  0xea   :  { %v234_v26 = vrot.slane %v223_v25, %v233_v24  ;;  %v842_v28 = vpop.f32.mrb[3].mxu1 }
  0xec   :  { %v235_v29 = vcombine.high %v234_v26, %v234_v26  ;;  %v242_v30 = vrot.slane %v234_v26, %v233_v24  ;;  %v781_v26 = vld [vmem:[%s1362_s12] ss:$0 sm:$0xff] }
  0xee   :  { %v249_v31 = vrot.slane %v235_v29, %v233_v24  ;;  %v253_v32 = vrot.slane %v242_v30, %v1192_v27  ;;  %v498_v24 = vpop.f32.mrb[4].mxu1 }
  0xef   :  { %v860_v25 = vpop.f32.mrb[5].mxu1 }
  0xf0   :  { %v257_v34 = vrot.slane %v249_v31, %v1192_v27  ;;  %v260_v35 = vadd.f32 %v253_v32, %v141_v21 }
  0xf2   :  { %v261_v36 = vadd.f32 %v831_v20, %v257_v34  ;;  %v269_v37 = vadd.f32 %v776_v33, %v260_v35  ;;  %v352_v20 = vld [vmem:[%s1359_s9 + $0x18] sm:$0xff]  ;;  %s1037_s9 = smov 64  }
  0xf3   :  { %v913_v23 = vpack.c.bf16 %v352_v20, %v351_v19 }
  0xf4   :  { %v270_v38 = vadd.f32 %v776_v33, %v261_v36  ;;  %949 = vtanh.f32 %v269_v37 }
  0xf5   :  { %914 = vmatpush3.bf16.msra.mxu0 %v913_v23  ;;  %v587_v28 = vpop.f32.mrb[6].mxu1 }
  0xf6   :  { %951 = vtanh.f32 %v270_v38  ;;  %924 = vmatprep.subr.bf16.mxu0 %v1033_v6  ;;  %v588_v29 = vadd.f32 %v781_v26, %v587_v28  ;;  %v871_v30 = vpop.f32.mrb[7].mxu1 }
  0xfe   :  { %v950_v40 = vpop.eup %949 }
  0xff   :  { %v280_v41 = vmul.f32 %v950_v40, %v777_v39 }
 0x100   :  { %v952_v42 = vpop.eup %951 }
 0x101   :  { %v282_v43 = vsel %vm68_vm0, %v280_v41, 0.0  ;;  %v281_v44 = vmul.f32 %v952_v42, %v777_v39 }
 0x102   :  { %283 = vadd.xlane.f32.xlu0 %v282_v43 }
 0x103   :  { %v285_v45 = vsel %vm68_vm0, %v281_v44, 0.0 }
 0x106   :  { %286 = vadd.xlane.f32.xlu0 %v285_v45 }
 0x18f   :  { %v284_v47 = vpop.xlane.xlu0 %283 }
 0x190   :  { %v296_v51 = vrot.slane %v284_v47, %v295_v48 }
 0x193   :  { %v287_v50 = vpop.xlane.xlu0 %286 }
 0x194   :  { %v300_v52 = vrot.slane %v287_v50, %v295_v48  ;;  %v780_v48 = vld [vmem:[%s1361_s11] ss:$0 sm:$0xff] }
 0x196   :  { %v302_v53 = vsel %vm301_vm2, %v300_v52, %v296_v51 }
 0x197   :  { %v304_v54 = vsel %vm288_vm3, %v302_v53, -1e+10 }
 0x198   :  { %v306_v55 = vsel %vm305_vm4, %v304_v54, -inf }
 0x199   :  { %307 = vmax.xlane.f32.xlu1 %v306_v55 }
 0x226   :  { %v308_v56 = vpop.xlane.xlu1 %307 }
 0x227   :  { %v309_v57 = vsub.f32 %v304_v54, %v308_v56 }
 0x229   :  { %v310_v58 = vmul.f32 1.442695, %v309_v57 }
 0x22b   :  { %953 = vpow2.f32 %v310_v58 }
 0x235   :  { %v954_v59 = vpop.eup %953 }
 0x236   :  { %v312_v60 = vsel %vm305_vm4, %v954_v59, 0.0 }
 0x237   :  { %313 = vadd.xlane.f32.xlu1 %v312_v60  ;;  %v639_v60 = vld [vmem:[%s1363_s13] sm:$0xff] }
 0x238   :  { %v925_v63 = vpack.c.bf16 %v640_v61, %v639_v60 }
 0x2c4   :  { %v314_v10 = vpop.xlane.xlu1 %313 }
 0x2c5   :  { %955 = vrcp.f32 %v314_v10  ;;  %v646_v10 = vld [vmem:[%s1363_s13 + $0x38] sm:$0xff] }
 0x2c6   :  { %v934_v12 = vpack.c.bf16 %v646_v10, %v645_v9 }
 0x2cf   :  { %v956_v17 = vpop.eup %955 }
 0x2d0   :  { %v316_v18 = vmul.f32 %v956_v17, %v954_v59 }
 0x2d2   :  { %v327_v21 = vrot.slane %v316_v18, %v326_v14  ;;  %637 = vst.msk [vmem:[#allocation7] sm:$0x3] %vm305_vm4, %v316_v18  ;;  %v320_v22 = vrot.slane %v316_v18, %v1192_v27  ;;  %v648_v14 = vld [vmem:[%s1363_s13 + $0x48] sm:$0xff] }
 0x2d3   :  { %v937_v15 = vpack.c.bf16 %v648_v14, %v647_v13 }
 0x2d4   :  { %329 = vbcast.lane.b32.xlu1 %v327_v21, 256  ;;  %322 = vbcast.lane.b32.xlu0 %v320_v22, 256 }
 0x2d8   :  { %599 = vrot.lane.b32.xlu1 %v588_v29, %s1037_s9 }
 0x346   :  { %v330_v31 = vpop.permute.xlu1 %329  ;;  %v323_v27 = vpop.permute.xlu0 %322 }
 0x347   :  { %v332_v32 = vmul.f32 %v330_v31, %v1164_v11  ;;  %v331_v33 = vmul.f32 %v323_v27, %v1148_v5 }
 0x349   :  { %v340_v34 = vsel %vm68_vm0, %v332_v32, 0.0  ;;  %v333_v35 = vsel %vm68_vm0, %v331_v33, 0.0 }
 0x34a   :  { %v341_v36 = vrot.slane %v340_v34, 4  ;;  %v334_v37 = vrot.slane %v333_v35, 4  ;;  %v600_v56 = vpop.permute.xlu1 %599 }
 0x34c   :  { %v342_v38 = vadd.f32 %v341_v36, %v340_v34  ;;  %v335_v39 = vadd.f32 %v334_v37, %v333_v35 }
 0x34e   :  { %v343_v40 = vrot.slane %v342_v38, 2  ;;  %v336_v41 = vrot.slane %v335_v39, 2 }
 0x350   :  { %v344_v42 = vadd.f32 %v343_v40, %v342_v38  ;;  %v337_v43 = vadd.f32 %v336_v41, %v335_v39 }
 0x352   :  { %v345_v44 = vrot.slane %v344_v42, 1  ;;  %v338_v45 = vrot.slane %v337_v43, 1 }
 0x354   :  { %v346_v46 = vadd.f32 %v345_v44, %v344_v42  ;;  %v339_v47 = vadd.f32 %v338_v45, %v337_v43 }
 0x356   :  { %v355_v11 = vsel %vm301_vm2, %v346_v46, %v339_v47 }
 0x357   :  { %852 = vmatmul.mubr.msk.f32.vlgmr.msra.gmra.mrb[0].mxu0 %vm68_vm0, %v355_v11 }
 0x358   :  { %892 = vmatprep.mubr.msk.f32.mxu0 %vm1034_vm1, %v1035_v8  ;;  %926 = vmatpush3.bf16.msra.mxu0 %v925_v63 }
 0x359   :  { %927 = vmatprep.subr.bf16.mxu0 %v1033_v6 }
 0x42a   :  { %v424_v5 = vpop.f32.mrb[0].mxu0 }
 0x42b   :  { %v499_v49 = vadd.f32 %v498_v24, %v424_v5  ;;  %v853_v50 = vpop.f32.mrb[1].mxu0 }
 0x42d   :  { %v509_v51 = vadd.f32 %v780_v48, %v499_v49 }
 0x42f   :  { %v591_v52 = vadd.f32 %v588_v29, %v509_v51 }
 0x431   :  { %v783_v53 = vmul.f32 -1.442695, %v591_v52 }
 0x433   :  { %957 = vpow2.f32 %v783_v53 }
 0x43d   :  { %v958_v54 = vpop.eup %957 }
 0x43e   :  { %v595_v55 = vadd.f32 1.0, %v958_v54 }
 0x440   :  { %959 = vrcp.f32 %v595_v55 }
 0x44a   :  { %v960_v57 = vpop.eup %959 }
 0x44b   :  { %v602_v58 = vmul.f32 %v960_v57, %v600_v56  ;;  %v609_v18 = vsub.f32 1.0, %v960_v57 }
 0x44d   :  { %604 = vrot.lane.b32.xlu1 %v602_v58, %s1037_s9 }
 0x451   :  { %615 = vrot.lane.b32.xlu1 %v1181_v16, %s1038_s1  ;;  %v642_v16 = vld [vmem:[%s1363_s13 + $0x18] sm:$0xff]  ;;  %s1040_s13 = smov [#allocation5]  }
 0x452   :  { %v928_v0 = vpack.c.bf16 %v642_v16, %v641_v62  ;;  %s748_s7 = sshll.u32 %s1040_s13, 4  ;;  %s749_s7 = int_to_ptr.vmem [resolvable:$true] %s748_s7 }
 0x453   :  { %s963_s12 = scalar_lea.vmem %s749_s7, 32  ;;  %p968_p1 = scmp.lt.s32.totalorder %s749_s7, %s749_s7 }
 0x454   :  { %929 = vmatpush3.bf16.msra.mxu0 %v928_v0  ;;  %p964_p0 = scmp.ne.s32.totalorder %s749_s7, %s963_s12  ;;  %p969_p2 = scmp.lt.s32.totalorder %s963_s12, %s963_s12 }
 0x455   :  { %626 = vrot.lane.b32.xlu1 %v355_v11, %s1038_s1  ;;  %930 = vmatprep.subr.bf16.mxu0 %v1033_v6 }
 0x456   :  { %p970_p3 = por %p969_p2, %p968_p1 }
 0x458   :  { %932 = vmatpush3.bf16.msra.mxu0 %v931_v7  ;;  %p971_p4 = pnand %p970_p3, %p964_p0 }
 0x459   :  { %933 = vmatprep.subr.bf16.mxu0 %v1033_v6 }
 0x45c   :  { %935 = vmatpush3.bf16.msra.mxu0 %v934_v12 }
 0x45d   :  { %936 = vmatprep.subr.bf16.mxu0 %v1033_v6 }
 0x460   :  { %938 = vmatpush3.bf16.msra.mxu0 %v937_v15 }
 0x4bf   :  { %v605_v8 = vpop.permute.xlu1 %604 }
 0x4c0   :  { %v607_v59 = vadd.f32 %v605_v8, %v509_v51 }
 0x4c2   :  { %961 = vtanh.f32 %v607_v59 }
 0x4c3   :  { %v616_v17 = vpop.permute.xlu1 %615 }
 0x4c4   :  { %v618_v20 = vmul.f32 %v960_v57, %v616_v17 }
 0x4c7   :  { %v627_v24 = vpop.permute.xlu1 %626 }
 0x4cc   :  { %v962_v1 = vpop.eup %961 }
 0x4cd   :  { %611 = vrot.lane.b32.xlu0 %v962_v1, %s1039_s8 }
 0x53f   :  { %v612_v19 = vpop.permute.xlu0 %611 }
 0x540   :  { %v614_v21 = vmul.f32 %v612_v19, %v609_v18 }
 0x542   :  { %v619_v22 = vadd.f32 %v618_v20, %v614_v21 }
 0x544   :  { %621 = vrot.lane.b32.xlu0 %v619_v22, %s1039_s8 }
 0x548   :  { %631 = vrot.lane.b32.xlu0 %v1226_v2, %s1037_s9 }
 0x5b6   :  { %v622_v23 = vpop.permute.xlu0 %621 }
 0x5b7   :  { %625 = vst.msk [vmem:[#allocation2] sm:$0x3] %vm624_vm6, %v622_v23  ;;  %636 = vst.msk [vmem:[#allocation5] sm:$0x3] %vm624_vm6, %v622_v23 }
 0x5b8   :  { %630 = vst.msk [vmem:[#allocation2] sm:$0x3] %vm629_vm7, %v627_v24 }
 0x5ba   :  { %v632_v25 = vpop.permute.xlu0 %631 }
 0x5bb   :  { %635 = vst.msk [vmem:[#allocation2] sm:$0x3] %vm634_vm8, %v632_v25 }
 0x5c2   :  { %v638_v6 = vld [vmem:[#allocation2] sm:$0x3] }
 0x5c3   :  { %893 = vmatmul.mubr.msk.f32.vlgmr.msra.gmra.mrb[2].mxu0 %vm656_vm9, %v638_v6 }
 0x5c4   :  { %974 = shalt.err (!%p971_p4)
}
 0x5c5   :  { %s975_s1 = scalar_lea.hbm %s1366_s16, 32 }
 0x5c6   :  { %p976_p5 = scmp.ne.s32.totalorder %s1366_s16, %s975_s1  ;;  %p979_p6 = scmp.lt.u32.totalorder %s975_s1, %s1366_s16 }
 0x5c8   :  { %p981_p7 = pnand %p979_p6, %p976_p5 }
 0x5ca   :  { %984 = shalt.err (!%p981_p7)
}
 0x5cb   :  { %751 = dma.vmem_to_hbm [thread:$0]  %s749_s7, 32, %s1366_s16, [#allocation6]  }
 0x5cc   :  { %s1041_s25 = smov [#allocation7]  }
 0x5cd   :  { %s758_s26 = sshll.u32 %s1041_s25, 4  ;;  %s759_s26 = int_to_ptr.vmem [resolvable:$true] %s758_s26 }
 0x5ce   :  { %s985_s8 = scalar_lea.vmem %s759_s26, 32  ;;  %p990_p9 = scmp.lt.s32.totalorder %s759_s26, %s759_s26 }
 0x5cf   :  { %p986_p8 = scmp.ne.s32.totalorder %s759_s26, %s985_s8  ;;  %p991_p10 = scmp.lt.s32.totalorder %s985_s8, %s985_s8 }
 0x5d1   :  { %p992_p11 = por %p991_p10, %p990_p9 }
 0x5d3   :  { %p993_p12 = pnand %p992_p11, %p986_p8 }
 0x5d5   :  { %996 = shalt.err (!%p993_p12)
}
 0x5d6   :  { %s997_s28 = scalar_lea.hbm %s1367_s17, 32 }
 0x5d7   :  { %p998_p13 = scmp.ne.s32.totalorder %s1367_s17, %s997_s28  ;;  %p1001_p0 = scmp.lt.u32.totalorder %s997_s28, %s1367_s17 }
 0x5d9   :  { %p1003_p1 = pnand %p1001_p0, %p998_p13 }
 0x5db   :  { %1006 = shalt.err (!%p1003_p1)
}
 0x5dc   :  { %761 = dma.vmem_to_hbm [thread:$0]  %s759_s26, 32, %s1367_s17, [#allocation6]   ;;  %v784_v2 = vld [vmem:[%s1364_s14] ss:$0 sm:$0xff]  ;;  %vm730_vm10 = vcmask 517120  }
 0x5dd   :  { %s1042_s19 = smov [#allocation3]  }
 0x5de   :  { %s738_s3 = sshll.u32 %s1042_s19, 4  ;;  %s739_s3 = int_to_ptr.vmem [resolvable:$true] %s738_s3 }
 0x5df   :  { %s1007_s13 = scalar_lea.vmem %s739_s3, 32  ;;  %p1012_p3 = scmp.lt.s32.totalorder %s739_s3, %s739_s3 }
 0x5e0   :  { %p1008_p2 = scmp.ne.s32.totalorder %s739_s3, %s1007_s13  ;;  %p1013_p4 = scmp.lt.s32.totalorder %s1007_s13, %s1007_s13 }
 0x5e2   :  { %p1014_p5 = por %p1013_p4, %p1012_p3 }
 0x5e4   :  { %p1015_p6 = pnand %p1014_p5, %p1008_p2 }
 0x696   :  { %v726_v26 = vpop.f32.mrb[2].mxu0 }
 0x697   :  { %v727_v28 = vadd.f32 %v784_v2, %v726_v26  ;;  %v894_v29 = vpop.f32.mrb[3].mxu0 }
 0x699   :  { %731 = vst.msk [vmem:[#allocation3] sm:$0x3] %vm730_vm10, %v727_v28 }
 0x69a   :  { %1018 = shalt.err (!%p1015_p6)
}
 0x69b   :  { %s1019_s12 = scalar_lea.hbm %s1365_s15, 32 }
 0x69c   :  { %p1020_p7 = scmp.ne.s32.totalorder %s1365_s15, %s1019_s12  ;;  %p1023_p8 = scmp.lt.u32.totalorder %s1019_s12, %s1365_s15 }
 0x69e   :  { %p1025_p9 = pnand %p1023_p8, %p1020_p7 }
 0x6a0   :  { %1028 = shalt.err (!%p1025_p9)
}
 0x6a1   :  { %741 = dma.vmem_to_hbm [thread:$0]  %s739_s3, 32, %s1365_s15, [#allocation4]  }
 0x6a2   :  { %1029 = dma.done.wait [#allocation4], 32  }
 0x6a3   :  { %1030 = vsyncadd [#allocation4], 4294967264 }
 0x6a4   :  { %1031 = dma.done.wait [#allocation6], 64  }
 0x6a5   :  { %1032 = vsyncadd [#allocation6], 4294967232 }
 0x6a6   :  { %771 = vsyncpa [#allocation4], 1 }
 0x6a7   :  { %772 = vsyncpa [#allocation6], 1 }

</bundles_post_ra>
